<compile_context>
chip_gen: v5e
topology: v5e:2x2
jax: 0.10.0
libtpu: 0.0.40
codegen_flags: <defaults>
</compile_context>

<pallas_src>
import math

import jax
import jax.numpy as jnp
import numpy as np
from jax import lax
from jax.experimental import pallas as pl
from jax.experimental.pallas import tpu as pltpu
from jax.scipy.linalg import block_diag

# ---------------------------------------------------------------------------
# Problem sizes (small, consistent with the module's forward)
# ---------------------------------------------------------------------------
B = 2          # batch
S = 16         # slate / sequence length (== seq_len of the module)
P = 8          # Linformer projection size (proj_size)
D = 32         # d_model
H = 4          # number of heads
D_K = D // H   # per-head dim
NEG_FILL = -1e9

# Constant-slab row layout (packed host-side in pack_params):
#   rows 0 : D          -> [ (wq/sqrt(dk)).T | wk.T | wv.T | wo.T ]   [D, 4D]
#   rows D : D+2BP      -> block_diag(proj.T x 2B), lanes 0:2BS       [4P, 4D] (lane-padded)
#   row  D+2BP          -> [ bq/sqrt(dk) | bk | bv | bo ]             [1, 4D]
ROW_PBLK = D
ROW_BIAS = D + 2 * B * P
CONST_ROWS = ROW_BIAS + 1            # 65
FOURD = 4 * D                        # 128 (lane-dense)


# ---------------------------------------------------------------------------
# Pallas kernel: single invocation, whole problem resident in VMEM (~50 KB).
# ---------------------------------------------------------------------------
def _linformer_mha_kernel(qv_ref, mask_ref, const_ref, out_ref):
    """
    qv_ref:    [4S, D]  bf16   [q_batch0; q_batch1; v_batch0; v_batch1]
    mask_ref:  [B*S, 1] f32    per-query-row padding mask (0 == padded)
    const_ref: [65, 4D] f32    packed weights / bias / block-diag projector (see layout above)
    out_ref:   [B*S, D] f32
    """
    # Three aligned rectangular loads from the fused constant slab (one input DMA).
    w_all = const_ref[0:D, :]                              # [D, 4D]  f32
    pblk = const_ref[ROW_PBLK:ROW_BIAS, 0:2 * B * S]       # [4P, 4S] f32
    b_all = const_ref[ROW_BIAS:ROW_BIAS + 1, :]            # [1, 4D]  f32

    qv_bf = qv_ref[...]                                    # [4S, D] bf16
    q2_bf = qv_bf[0:2 * S, :]                              # [2S, D] bf16 (aligned slice)

    # (1) Fused Linformer low-rank projection: ONE MXU matmul produces
    #     [k_low0; k_low1; v_low0; v_low1].  Key path uses QUERY (PyTorch zip quirk).
    low = jnp.dot(pblk.astype(jnp.bfloat16), qv_bf,
                  preferred_element_type=jnp.float32)                               # [4P, D] f32

    # (2) Input Linears with zero in-kernel concatenation:
    #     Q uses only its live column block; K/V share one dot over the [wk_t | wv_t]
    #     blocks (cross blocks are dead columns -- MXU is idle anyway).
    q_lin = jnp.dot(q2_bf, w_all[:, 0:D].astype(jnp.bfloat16),
                    preferred_element_type=jnp.float32) + b_all[:, 0:D]             # [2S, D]
    kv_lin = jnp.dot(low.astype(jnp.bfloat16), w_all[:, D:3 * D].astype(jnp.bfloat16),
                     preferred_element_type=jnp.float32) + b_all[:, D:3 * D]        # [4P, 2D]

    wo_t = w_all[:, 3 * D:]                                # [D, D] f32 (= wo.T, pre-transposed)
    bo = b_all[:, 3 * D:]                                  # [1, D] f32

    trans_b = (((1,), (1,)), ((), ()))                     # contract last dims -> no K transpose

    for b in range(B):
        # Per-batch bf16 operand views.  Slices are taken in f32 (8-aligned sublane
        # offsets) and packed to bf16 afterwards; per-head slices below are lane slices
        # (lane dim is not packed for bf16), so no awkward relayouts.
        qb = q_lin[b * S:(b + 1) * S, :].astype(jnp.bfloat16)                       # [S, D]
        kb = kv_lin[b * P:(b + 1) * P, 0:D].astype(jnp.bfloat16)                    # [P, D]
        vb = kv_lin[(B + b) * P:(B + b + 1) * P, D:2 * D].astype(jnp.bfloat16)      # [P, D]

        # Mask broadcast hoisted out of the head loop (JAX does not CSE broadcasts).
        # Keep masked_fill semantics (not a bias add) so fully-masked query rows give a
        # uniform softmax, matching PyTorch exactly.
        mpad = jnp.broadcast_to(mask_ref[b * S:(b + 1) * S, :], (S, P)) == 0.0      # [S, P] bool

        partials = []
        for h in range(H):
            lo = h * D_K
            # Scores: Q_h @ K_h^T via transposed-RHS dot_general (scale folded into wq).
            s = lax.dot_general(qb[:, lo:lo + D_K], kb[:, lo:lo + D_K], trans_b,
                                preferred_element_type=jnp.float32)                 # [S, P]
            s = jnp.where(mpad, NEG_FILL, s)
            # Softmax statistics stay in f32 (v5e VPU/EUP have no bf16).
            s_max = jnp.max(s, axis=-1, keepdims=True)
            e = jnp.exp(s - s_max)
            inv = pl.reciprocal(jnp.sum(e, axis=-1, keepdims=True), approx=True)    # EUP slot
            p_attn = e * inv                                       # dropout == identity (eval)
            x_h = jnp.dot(p_attn.astype(jnp.bfloat16), vb[:, lo:lo + D_K],
                          preferred_element_type=jnp.float32)                       # [S, d_k]
            partials.append(jnp.dot(x_h.astype(jnp.bfloat16),
                                    wo_t[lo:lo + D_K, :].astype(jnp.bfloat16),
                                    preferred_element_type=jnp.float32))            # [S, D]

        # Balanced tree sum of the per-head output-projection partials (no serial chain).
        while len(partials) > 1:
            partials = [partials[i] + partials[i + 1] if i + 1 < len(partials) else partials[i]
                        for i in range(0, len(partials), 2)]
        out_ref[b * S:(b + 1) * S, :] = partials[0] + bo


# ---------------------------------------------------------------------------
# Host-side one-time parameter packing (one constant slab -> one DMA)
# ---------------------------------------------------------------------------
def pack_params(params):
    """Fold 1/sqrt(d_k) into the Q Linear, pre-transpose all Linear weights, expand the
    Linformer projector into a block-diagonal matrix (so the low-rank projections of both
    batches and both operands are ONE matmul), and pack weights + projector + bias row
    into a single lane-dense [65, 4D] constant slab."""
    scale = 1.0 / math.sqrt(D_K)
    w_all = jnp.concatenate([(params["wq"] * scale).T, params["wk"].T,
                             params["wv"].T, params["wo"].T], axis=1)            # [D, 4D]
    b_all = jnp.concatenate([params["bq"] * scale, params["bk"],
                             params["bv"], params["bo"]], axis=1)                # [1, 4D]
    proj_t = params["proj"].T                                                    # [P, S]
    proj_blk = block_diag(*([proj_t] * (2 * B)))                                 # [2B*P, 2B*S]
    proj_blk = jnp.pad(proj_blk, ((0, 0), (0, FOURD - 2 * B * S)))               # lane-pad to 4D
    const = jnp.concatenate([w_all, proj_blk, b_all], axis=0).astype(jnp.float32)  # [65, 4D]
    return {"const": const}


# ---------------------------------------------------------------------------
# Wrapper
# ---------------------------------------------------------------------------
def linformer_mha(query, key, value, mask, packed):
    """query/key/value: [B,S,D]; mask: [B,1,S] (float 0/1).  `key` is unused
    (faithful to the PyTorch module's projection zip quirk)."""
    del key  # unused by the original forward

    # Stack [q_b0; q_b1; v_b0; v_b1] host-side: one bf16 [4S, D] operand, one DMA,
    # and no in-kernel concatenates (perf-review item 1 / bf16 item 3).
    qv = jnp.concatenate([query.reshape(B * S, D), value.reshape(B * S, D)],
                         axis=0).astype(jnp.bfloat16)                            # [4S, D]

    # mask.unsqueeze(1) -> [B,1,1,S]; permute(0,1,3,2) -> [B,1,S,1]: a per-QUERY-row
    # mask broadcast over heads and the projected key dim.  Flatten to [B*S, 1].
    mask_col = jnp.transpose(mask, (0, 2, 1)).reshape(B * S, 1).astype(jnp.float32)

    vmem = lambda: pl.BlockSpec(memory_space=pltpu.MemorySpace.VMEM)
    out = pl.pallas_call(
        _linformer_mha_kernel,
        out_shape=jax.ShapeDtypeStruct((B * S, D), jnp.float32),
        in_specs=[vmem(), vmem(), vmem()],
        out_specs=vmem(),
    )(qv, mask_col, packed["const"])
    return out.reshape(B, S, D)


# ---------------------------------------------------------------------------
# Pure-JAX reference (mirrors the PyTorch forward exactly, unpacked f32 params)
# ---------------------------------------------------------------------------
def linformer_mha_ref(query, key, value, mask, params):
    del key
    k_low = jnp.einsum('bsd,sp->bpd', query, params["proj"])
    v_low = jnp.einsum('bsd,sp->bpd', value, params["proj"])

    def lin(x, w, b):
        return x @ w.T + b

    Q = lin(query, params["wq"], params["bq"][0]).reshape(B, S, H, D_K).transpose(0, 2, 1, 3)
    K = lin(k_low, params["wk"], params["bk"][0]).reshape(B, P, H, D_K).transpose(0, 2, 1, 3)
    V = lin(v_low, params["wv"], params["bv"][0]).reshape(B, P, H, D_K).transpose(0, 2, 1, 3)

    scores = jnp.einsum('bhsd,bhpd->bhsp', Q, K) / math.sqrt(D_K)
    m = mask[:, None, :, :].transpose(0, 1, 3, 2)    # [B,1,S,1]
    scores = jnp.where(m == 0.0, NEG_FILL, scores)
    p_attn = jax.nn.softmax(scores, axis=-1)
    x = jnp.einsum('bhsp,bhpd->bhsd', p_attn, V)
    x = x.transpose(0, 2, 1, 3).reshape(B, S, D)
    return lin(x, params["wo"], params["bo"][0])


# ---------------------------------------------------------------------------
# Deterministic parameter / input construction and test
# ---------------------------------------------------------------------------
def make_params(key):
    keys = jax.random.split(key, 9)
    bound = 1.0 / math.sqrt(D)
    u = lambda k, shape: jax.random.uniform(k, shape, jnp.float32, -bound, bound)
    return {
        # nn.Parameter(torch.zeros(seq_len, proj_size)) -- initialized with a small
        # deterministic random value so the kernel is non-trivial.
        "proj": 0.1 * jax.random.normal(keys[0], (S, P), jnp.float32),
        "wq": u(keys[1], (D, D)), "bq": u(keys[2], (1, D)),
        "wk": u(keys[3], (D, D)), "bk": u(keys[4], (1, D)),
        "wv": u(keys[5], (D, D)), "bv": u(keys[6], (1, D)),
        "wo": u(keys[7], (D, D)), "bo": u(keys[8], (1, D)),
    }


if __name__ == "__main__":
    root = jax.random.PRNGKey(0)
    k_p, k_q, k_k, k_v = jax.random.split(root, 4)

    params = make_params(k_p)
    packed = pack_params(params)          # one-time host-side packing

    query = jax.random.normal(k_q, (B, S, D), jnp.float32)
    key_t = jax.random.normal(k_k, (B, S, D), jnp.float32)   # unused by forward
    value = jax.random.normal(k_v, (B, S, D), jnp.float32)

    # mask: [B, 1, S] with the last 3 positions of batch 1 padded out
    # (exercises fully-masked query rows).
    mask = jnp.ones((B, 1, S), jnp.float32)
    mask = mask.at[1, 0, S - 3:].set(0.0)

    out = jax.block_until_ready(linformer_mha(query, key_t, value, mask, packed))
    ref = jax.block_until_ready(linformer_mha_ref(query, key_t, value, mask, params))

    # Tolerance accounts for bf16 MXU operands (f32 accumulation, f32 softmax stats)
    # and pl.reciprocal(approx=True) in the softmax denominator vs the exact f32 reference.
    np.testing.assert_allclose(np.asarray(out), np.asarray(ref), rtol=2e-2, atol=1e-2)
    print("KERNEL_OK")
</pallas_src>

<mosaic_0001>
module attributes {stable_mosaic.version = 11 : i64} {
  func.func @_linformer_mha_kernel(%arg0: memref<64x32xbf16, #tpu.memory_space<vmem>>, %arg1: memref<32x1xf32, #tpu.memory_space<vmem>>, %arg2: memref<65x128xf32, #tpu.memory_space<vmem>>, %arg3: memref<32x32xf32, #tpu.memory_space<vmem>>) attributes {dimension_semantics = [], scalar_prefetch = 0 : i64, scratch_operands = 0 : i64, tpu.core_type = #tpu.core_type<tc>} {
    %c0 = arith.constant 0 : index
    %c0_0 = arith.constant 0 : index
    %0 = vector.load %arg2[%c0, %c0_0] : memref<65x128xf32, #tpu.memory_space<vmem>>, vector<32x128xf32>
    %c32 = arith.constant 32 : index
    %c0_1 = arith.constant 0 : index
    %1 = vector.load %arg2[%c32, %c0_1] : memref<65x128xf32, #tpu.memory_space<vmem>>, vector<32x64xf32>
    %c64 = arith.constant 64 : index
    %c0_2 = arith.constant 0 : index
    %2 = vector.load %arg2[%c64, %c0_2] : memref<65x128xf32, #tpu.memory_space<vmem>>, vector<1x128xf32>
    %c0_3 = arith.constant 0 : index
    %c0_4 = arith.constant 0 : index
    %3 = vector.load %arg0[%c0_3, %c0_4] : memref<64x32xbf16, #tpu.memory_space<vmem>>, vector<64x32xbf16>
    %4 = vector.extract_strided_slice %3 {offsets = [0, 0], sizes = [32, 32], strides = [1, 1]} : vector<64x32xbf16> to vector<32x32xbf16>
    %5 = arith.truncf %1 : vector<32x64xf32> to vector<32x64xbf16>
    %cst = arith.constant dense<0.000000e+00> : vector<32x32xf32>
    %6 = tpu.matmul %5, %3, %cst {dimension_numbers = #tpu.dot_dimension_numbers<[1], [0], [0], [1], [0, 0, 1, 1], [], []>} : vector<32x64xbf16>, vector<64x32xbf16>, vector<32x32xf32> -> vector<32x32xf32>
    %7 = vector.extract_strided_slice %0 {offsets = [0, 0], sizes = [32, 32], strides = [1, 1]} : vector<32x128xf32> to vector<32x32xf32>
    %8 = arith.truncf %7 : vector<32x32xf32> to vector<32x32xbf16>
    %cst_5 = arith.constant dense<0.000000e+00> : vector<32x32xf32>
    %9 = tpu.matmul %4, %8, %cst_5 {dimension_numbers = #tpu.dot_dimension_numbers<[1], [0], [0], [1], [0, 0, 1, 1], [], []>} : vector<32x32xbf16>, vector<32x32xbf16>, vector<32x32xf32> -> vector<32x32xf32>
    %10 = vector.extract_strided_slice %2 {offsets = [0, 0], sizes = [1, 32], strides = [1, 1]} : vector<1x128xf32> to vector<1x32xf32>
    %11 = vector.broadcast %10 : vector<1x32xf32> to vector<32x32xf32>
    %12 = arith.addf %9, %11 : vector<32x32xf32>
    %13 = arith.truncf %6 : vector<32x32xf32> to vector<32x32xbf16>
    %14 = vector.extract_strided_slice %0 {offsets = [0, 32], sizes = [32, 64], strides = [1, 1]} : vector<32x128xf32> to vector<32x64xf32>
    %15 = arith.truncf %14 : vector<32x64xf32> to vector<32x64xbf16>
    %cst_6 = arith.constant dense<0.000000e+00> : vector<32x64xf32>
    %16 = tpu.matmul %13, %15, %cst_6 {dimension_numbers = #tpu.dot_dimension_numbers<[1], [0], [0], [1], [0, 0, 1, 1], [], []>} : vector<32x32xbf16>, vector<32x64xbf16>, vector<32x64xf32> -> vector<32x64xf32>
    %17 = vector.extract_strided_slice %2 {offsets = [0, 32], sizes = [1, 64], strides = [1, 1]} : vector<1x128xf32> to vector<1x64xf32>
    %18 = vector.broadcast %17 : vector<1x64xf32> to vector<32x64xf32>
    %19 = arith.addf %16, %18 : vector<32x64xf32>
    %20 = vector.extract_strided_slice %0 {offsets = [0, 96], sizes = [32, 32], strides = [1, 1]} : vector<32x128xf32> to vector<32x32xf32>
    %21 = vector.extract_strided_slice %2 {offsets = [0, 96], sizes = [1, 32], strides = [1, 1]} : vector<1x128xf32> to vector<1x32xf32>
    %22 = vector.extract_strided_slice %12 {offsets = [0, 0], sizes = [16, 32], strides = [1, 1]} : vector<32x32xf32> to vector<16x32xf32>
    %23 = arith.truncf %22 : vector<16x32xf32> to vector<16x32xbf16>
    %24 = vector.extract_strided_slice %19 {offsets = [0, 0], sizes = [8, 32], strides = [1, 1]} : vector<32x64xf32> to vector<8x32xf32>
    %25 = arith.truncf %24 : vector<8x32xf32> to vector<8x32xbf16>
    %26 = vector.extract_strided_slice %19 {offsets = [16, 32], sizes = [8, 32], strides = [1, 1]} : vector<32x64xf32> to vector<8x32xf32>
    %27 = arith.truncf %26 : vector<8x32xf32> to vector<8x32xbf16>
    %c0_7 = arith.constant 0 : index
    %c0_8 = arith.constant 0 : index
    %28 = vector.load %arg1[%c0_7, %c0_8] : memref<32x1xf32, #tpu.memory_space<vmem>>, vector<16x1xf32>
    %29 = vector.shape_cast %28 : vector<16x1xf32> to vector<16x1xf32>
    %30 = vector.broadcast %29 : vector<16x1xf32> to vector<16x8xf32>
    %cst_9 = arith.constant 0.000000e+00 : f32
    %31 = vector.broadcast %cst_9 : f32 to vector<16x8xf32>
    %32 = arith.cmpf oeq, %30, %31 : vector<16x8xf32>
    %33 = vector.extract_strided_slice %23 {offsets = [0, 0], sizes = [16, 8], strides = [1, 1]} : vector<16x32xbf16> to vector<16x8xbf16>
    %34 = vector.extract_strided_slice %25 {offsets = [0, 0], sizes = [8, 8], strides = [1, 1]} : vector<8x32xbf16> to vector<8x8xbf16>
    %cst_10 = arith.constant dense<0.000000e+00> : vector<16x8xf32>
    %35 = tpu.matmul %33, %34, %cst_10 {dimension_numbers = #tpu.dot_dimension_numbers<[1], [1], [0], [0], [0, 0, 1, 0], [], []>} : vector<16x8xbf16>, vector<8x8xbf16>, vector<16x8xf32> -> vector<16x8xf32>
    %cst_11 = arith.constant -1.000000e+09 : f32
    %36 = vector.broadcast %cst_11 : f32 to vector<16x8xf32>
    %37 = arith.select %32, %36, %35 : vector<16x8xi1>, vector<16x8xf32>
    %cst_12 = arith.constant dense<0xFF800000> : vector<16xf32>
    %38 = vector.multi_reduction <maximumf>, %37, %cst_12 [1] : vector<16x8xf32> to vector<16xf32>
    %39 = vector.shape_cast %38 : vector<16xf32> to vector<16x1xf32>
    %40 = vector.broadcast %39 : vector<16x1xf32> to vector<16x8xf32>
    %41 = arith.subf %37, %40 : vector<16x8xf32>
    %42 = math.exp %41 : vector<16x8xf32>
    %cst_13 = arith.constant dense<0.000000e+00> : vector<16xf32>
    %43 = vector.multi_reduction <add>, %42, %cst_13 [1] : vector<16x8xf32> to vector<16xf32>
    %44 = vector.shape_cast %43 : vector<16xf32> to vector<16x1xf32>
    %45 = tpu.reciprocal %44 {approx = true} : vector<16x1xf32> -> vector<16x1xf32>
    %46 = vector.broadcast %45 : vector<16x1xf32> to vector<16x8xf32>
    %47 = arith.mulf %42, %46 : vector<16x8xf32>
    %48 = arith.truncf %47 : vector<16x8xf32> to vector<16x8xbf16>
    %49 = vector.extract_strided_slice %27 {offsets = [0, 0], sizes = [8, 8], strides = [1, 1]} : vector<8x32xbf16> to vector<8x8xbf16>
    %cst_14 = arith.constant dense<0.000000e+00> : vector<16x8xf32>
    %50 = tpu.matmul %48, %49, %cst_14 {dimension_numbers = #tpu.dot_dimension_numbers<[1], [0], [0], [1], [0, 0, 1, 1], [], []>} : vector<16x8xbf16>, vector<8x8xbf16>, vector<16x8xf32> -> vector<16x8xf32>
    %51 = arith.truncf %50 : vector<16x8xf32> to vector<16x8xbf16>
    %52 = vector.extract_strided_slice %20 {offsets = [0, 0], sizes = [8, 32], strides = [1, 1]} : vector<32x32xf32> to vector<8x32xf32>
    %53 = arith.truncf %52 : vector<8x32xf32> to vector<8x32xbf16>
    %cst_15 = arith.constant dense<0.000000e+00> : vector<16x32xf32>
    %54 = tpu.matmul %51, %53, %cst_15 {dimension_numbers = #tpu.dot_dimension_numbers<[1], [0], [0], [1], [0, 0, 1, 1], [], []>} : vector<16x8xbf16>, vector<8x32xbf16>, vector<16x32xf32> -> vector<16x32xf32>
    %55 = vector.extract_strided_slice %23 {offsets = [0, 8], sizes = [16, 8], strides = [1, 1]} : vector<16x32xbf16> to vector<16x8xbf16>
    %56 = vector.extract_strided_slice %25 {offsets = [0, 8], sizes = [8, 8], strides = [1, 1]} : vector<8x32xbf16> to vector<8x8xbf16>
    %cst_16 = arith.constant dense<0.000000e+00> : vector<16x8xf32>
    %57 = tpu.matmul %55, %56, %cst_16 {dimension_numbers = #tpu.dot_dimension_numbers<[1], [1], [0], [0], [0, 0, 1, 0], [], []>} : vector<16x8xbf16>, vector<8x8xbf16>, vector<16x8xf32> -> vector<16x8xf32>
    %cst_17 = arith.constant -1.000000e+09 : f32
    %58 = vector.broadcast %cst_17 : f32 to vector<16x8xf32>
    %59 = arith.select %32, %58, %57 : vector<16x8xi1>, vector<16x8xf32>
    %cst_18 = arith.constant dense<0xFF800000> : vector<16xf32>
    %60 = vector.multi_reduction <maximumf>, %59, %cst_18 [1] : vector<16x8xf32> to vector<16xf32>
    %61 = vector.shape_cast %60 : vector<16xf32> to vector<16x1xf32>
    %62 = vector.broadcast %61 : vector<16x1xf32> to vector<16x8xf32>
    %63 = arith.subf %59, %62 : vector<16x8xf32>
    %64 = math.exp %63 : vector<16x8xf32>
    %cst_19 = arith.constant dense<0.000000e+00> : vector<16xf32>
    %65 = vector.multi_reduction <add>, %64, %cst_19 [1] : vector<16x8xf32> to vector<16xf32>
    %66 = vector.shape_cast %65 : vector<16xf32> to vector<16x1xf32>
    %67 = tpu.reciprocal %66 {approx = true} : vector<16x1xf32> -> vector<16x1xf32>
    %68 = vector.broadcast %67 : vector<16x1xf32> to vector<16x8xf32>
    %69 = arith.mulf %64, %68 : vector<16x8xf32>
    %70 = arith.truncf %69 : vector<16x8xf32> to vector<16x8xbf16>
    %71 = vector.extract_strided_slice %27 {offsets = [0, 8], sizes = [8, 8], strides = [1, 1]} : vector<8x32xbf16> to vector<8x8xbf16>
    %cst_20 = arith.constant dense<0.000000e+00> : vector<16x8xf32>
    %72 = tpu.matmul %70, %71, %cst_20 {dimension_numbers = #tpu.dot_dimension_numbers<[1], [0], [0], [1], [0, 0, 1, 1], [], []>} : vector<16x8xbf16>, vector<8x8xbf16>, vector<16x8xf32> -> vector<16x8xf32>
    %73 = arith.truncf %72 : vector<16x8xf32> to vector<16x8xbf16>
    %74 = vector.extract_strided_slice %20 {offsets = [8, 0], sizes = [8, 32], strides = [1, 1]} : vector<32x32xf32> to vector<8x32xf32>
    %75 = arith.truncf %74 : vector<8x32xf32> to vector<8x32xbf16>
    %cst_21 = arith.constant dense<0.000000e+00> : vector<16x32xf32>
    %76 = tpu.matmul %73, %75, %cst_21 {dimension_numbers = #tpu.dot_dimension_numbers<[1], [0], [0], [1], [0, 0, 1, 1], [], []>} : vector<16x8xbf16>, vector<8x32xbf16>, vector<16x32xf32> -> vector<16x32xf32>
    %77 = vector.extract_strided_slice %23 {offsets = [0, 16], sizes = [16, 8], strides = [1, 1]} : vector<16x32xbf16> to vector<16x8xbf16>
    %78 = vector.extract_strided_slice %25 {offsets = [0, 16], sizes = [8, 8], strides = [1, 1]} : vector<8x32xbf16> to vector<8x8xbf16>
    %cst_22 = arith.constant dense<0.000000e+00> : vector<16x8xf32>
    %79 = tpu.matmul %77, %78, %cst_22 {dimension_numbers = #tpu.dot_dimension_numbers<[1], [1], [0], [0], [0, 0, 1, 0], [], []>} : vector<16x8xbf16>, vector<8x8xbf16>, vector<16x8xf32> -> vector<16x8xf32>
    %cst_23 = arith.constant -1.000000e+09 : f32
    %80 = vector.broadcast %cst_23 : f32 to vector<16x8xf32>
    %81 = arith.select %32, %80, %79 : vector<16x8xi1>, vector<16x8xf32>
    %cst_24 = arith.constant dense<0xFF800000> : vector<16xf32>
    %82 = vector.multi_reduction <maximumf>, %81, %cst_24 [1] : vector<16x8xf32> to vector<16xf32>
    %83 = vector.shape_cast %82 : vector<16xf32> to vector<16x1xf32>
    %84 = vector.broadcast %83 : vector<16x1xf32> to vector<16x8xf32>
    %85 = arith.subf %81, %84 : vector<16x8xf32>
    %86 = math.exp %85 : vector<16x8xf32>
    %cst_25 = arith.constant dense<0.000000e+00> : vector<16xf32>
    %87 = vector.multi_reduction <add>, %86, %cst_25 [1] : vector<16x8xf32> to vector<16xf32>
    %88 = vector.shape_cast %87 : vector<16xf32> to vector<16x1xf32>
    %89 = tpu.reciprocal %88 {approx = true} : vector<16x1xf32> -> vector<16x1xf32>
    %90 = vector.broadcast %89 : vector<16x1xf32> to vector<16x8xf32>
    %91 = arith.mulf %86, %90 : vector<16x8xf32>
    %92 = arith.truncf %91 : vector<16x8xf32> to vector<16x8xbf16>
    %93 = vector.extract_strided_slice %27 {offsets = [0, 16], sizes = [8, 8], strides = [1, 1]} : vector<8x32xbf16> to vector<8x8xbf16>
    %cst_26 = arith.constant dense<0.000000e+00> : vector<16x8xf32>
    %94 = tpu.matmul %92, %93, %cst_26 {dimension_numbers = #tpu.dot_dimension_numbers<[1], [0], [0], [1], [0, 0, 1, 1], [], []>} : vector<16x8xbf16>, vector<8x8xbf16>, vector<16x8xf32> -> vector<16x8xf32>
    %95 = arith.truncf %94 : vector<16x8xf32> to vector<16x8xbf16>
    %96 = vector.extract_strided_slice %20 {offsets = [16, 0], sizes = [8, 32], strides = [1, 1]} : vector<32x32xf32> to vector<8x32xf32>
    %97 = arith.truncf %96 : vector<8x32xf32> to vector<8x32xbf16>
    %cst_27 = arith.constant dense<0.000000e+00> : vector<16x32xf32>
    %98 = tpu.matmul %95, %97, %cst_27 {dimension_numbers = #tpu.dot_dimension_numbers<[1], [0], [0], [1], [0, 0, 1, 1], [], []>} : vector<16x8xbf16>, vector<8x32xbf16>, vector<16x32xf32> -> vector<16x32xf32>
    %99 = vector.extract_strided_slice %23 {offsets = [0, 24], sizes = [16, 8], strides = [1, 1]} : vector<16x32xbf16> to vector<16x8xbf16>
    %100 = vector.extract_strided_slice %25 {offsets = [0, 24], sizes = [8, 8], strides = [1, 1]} : vector<8x32xbf16> to vector<8x8xbf16>
    %cst_28 = arith.constant dense<0.000000e+00> : vector<16x8xf32>
    %101 = tpu.matmul %99, %100, %cst_28 {dimension_numbers = #tpu.dot_dimension_numbers<[1], [1], [0], [0], [0, 0, 1, 0], [], []>} : vector<16x8xbf16>, vector<8x8xbf16>, vector<16x8xf32> -> vector<16x8xf32>
    %cst_29 = arith.constant -1.000000e+09 : f32
    %102 = vector.broadcast %cst_29 : f32 to vector<16x8xf32>
    %103 = arith.select %32, %102, %101 : vector<16x8xi1>, vector<16x8xf32>
    %cst_30 = arith.constant dense<0xFF800000> : vector<16xf32>
    %104 = vector.multi_reduction <maximumf>, %103, %cst_30 [1] : vector<16x8xf32> to vector<16xf32>
    %105 = vector.shape_cast %104 : vector<16xf32> to vector<16x1xf32>
    %106 = vector.broadcast %105 : vector<16x1xf32> to vector<16x8xf32>
    %107 = arith.subf %103, %106 : vector<16x8xf32>
    %108 = math.exp %107 : vector<16x8xf32>
    %cst_31 = arith.constant dense<0.000000e+00> : vector<16xf32>
    %109 = vector.multi_reduction <add>, %108, %cst_31 [1] : vector<16x8xf32> to vector<16xf32>
    %110 = vector.shape_cast %109 : vector<16xf32> to vector<16x1xf32>
    %111 = tpu.reciprocal %110 {approx = true} : vector<16x1xf32> -> vector<16x1xf32>
    %112 = vector.broadcast %111 : vector<16x1xf32> to vector<16x8xf32>
    %113 = arith.mulf %108, %112 : vector<16x8xf32>
    %114 = arith.truncf %113 : vector<16x8xf32> to vector<16x8xbf16>
    %115 = vector.extract_strided_slice %27 {offsets = [0, 24], sizes = [8, 8], strides = [1, 1]} : vector<8x32xbf16> to vector<8x8xbf16>
    %cst_32 = arith.constant dense<0.000000e+00> : vector<16x8xf32>
    %116 = tpu.matmul %114, %115, %cst_32 {dimension_numbers = #tpu.dot_dimension_numbers<[1], [0], [0], [1], [0, 0, 1, 1], [], []>} : vector<16x8xbf16>, vector<8x8xbf16>, vector<16x8xf32> -> vector<16x8xf32>
    %117 = arith.truncf %116 : vector<16x8xf32> to vector<16x8xbf16>
    %118 = vector.extract_strided_slice %20 {offsets = [24, 0], sizes = [8, 32], strides = [1, 1]} : vector<32x32xf32> to vector<8x32xf32>
    %119 = arith.truncf %118 : vector<8x32xf32> to vector<8x32xbf16>
    %cst_33 = arith.constant dense<0.000000e+00> : vector<16x32xf32>
    %120 = tpu.matmul %117, %119, %cst_33 {dimension_numbers = #tpu.dot_dimension_numbers<[1], [0], [0], [1], [0, 0, 1, 1], [], []>} : vector<16x8xbf16>, vector<8x32xbf16>, vector<16x32xf32> -> vector<16x32xf32>
    %121 = arith.addf %54, %76 : vector<16x32xf32>
    %122 = arith.addf %98, %120 : vector<16x32xf32>
    %123 = arith.addf %121, %122 : vector<16x32xf32>
    %124 = vector.broadcast %21 : vector<1x32xf32> to vector<16x32xf32>
    %125 = arith.addf %123, %124 : vector<16x32xf32>
    %c0_34 = arith.constant 0 : index
    %c0_35 = arith.constant 0 : index
    %126 = vector.load %arg3[%c0_34, %c0_35] : memref<32x32xf32, #tpu.memory_space<vmem>>, vector<16x32xf32>
    tpu.vector_store %arg3[%c0_34, %c0_35], %125 {strides = array<i32>} : memref<32x32xf32, #tpu.memory_space<vmem>>, vector<16x32xf32>,
    %127 = vector.extract_strided_slice %12 {offsets = [16, 0], sizes = [16, 32], strides = [1, 1]} : vector<32x32xf32> to vector<16x32xf32>
    %128 = arith.truncf %127 : vector<16x32xf32> to vector<16x32xbf16>
    %129 = vector.extract_strided_slice %19 {offsets = [8, 0], sizes = [8, 32], strides = [1, 1]} : vector<32x64xf32> to vector<8x32xf32>
    %130 = arith.truncf %129 : vector<8x32xf32> to vector<8x32xbf16>
    %131 = vector.extract_strided_slice %19 {offsets = [24, 32], sizes = [8, 32], strides = [1, 1]} : vector<32x64xf32> to vector<8x32xf32>
    %132 = arith.truncf %131 : vector<8x32xf32> to vector<8x32xbf16>
    %c16 = arith.constant 16 : index
    %c0_36 = arith.constant 0 : index
    %133 = vector.load %arg1[%c16, %c0_36] : memref<32x1xf32, #tpu.memory_space<vmem>>, vector<16x1xf32>
    %134 = vector.shape_cast %133 : vector<16x1xf32> to vector<16x1xf32>
    %135 = vector.broadcast %134 : vector<16x1xf32> to vector<16x8xf32>
    %cst_37 = arith.constant 0.000000e+00 : f32
    %136 = vector.broadcast %cst_37 : f32 to vector<16x8xf32>
    %137 = arith.cmpf oeq, %135, %136 : vector<16x8xf32>
    %138 = vector.extract_strided_slice %128 {offsets = [0, 0], sizes = [16, 8], strides = [1, 1]} : vector<16x32xbf16> to vector<16x8xbf16>
    %139 = vector.extract_strided_slice %130 {offsets = [0, 0], sizes = [8, 8], strides = [1, 1]} : vector<8x32xbf16> to vector<8x8xbf16>
    %cst_38 = arith.constant dense<0.000000e+00> : vector<16x8xf32>
    %140 = tpu.matmul %138, %139, %cst_38 {dimension_numbers = #tpu.dot_dimension_numbers<[1], [1], [0], [0], [0, 0, 1, 0], [], []>} : vector<16x8xbf16>, vector<8x8xbf16>, vector<16x8xf32> -> vector<16x8xf32>
    %cst_39 = arith.constant -1.000000e+09 : f32
    %141 = vector.broadcast %cst_39 : f32 to vector<16x8xf32>
    %142 = arith.select %137, %141, %140 : vector<16x8xi1>, vector<16x8xf32>
    %cst_40 = arith.constant dense<0xFF800000> : vector<16xf32>
    %143 = vector.multi_reduction <maximumf>, %142, %cst_40 [1] : vector<16x8xf32> to vector<16xf32>
    %144 = vector.shape_cast %143 : vector<16xf32> to vector<16x1xf32>
    %145 = vector.broadcast %144 : vector<16x1xf32> to vector<16x8xf32>
    %146 = arith.subf %142, %145 : vector<16x8xf32>
    %147 = math.exp %146 : vector<16x8xf32>
    %cst_41 = arith.constant dense<0.000000e+00> : vector<16xf32>
    %148 = vector.multi_reduction <add>, %147, %cst_41 [1] : vector<16x8xf32> to vector<16xf32>
    %149 = vector.shape_cast %148 : vector<16xf32> to vector<16x1xf32>
    %150 = tpu.reciprocal %149 {approx = true} : vector<16x1xf32> -> vector<16x1xf32>
    %151 = vector.broadcast %150 : vector<16x1xf32> to vector<16x8xf32>
    %152 = arith.mulf %147, %151 : vector<16x8xf32>
    %153 = arith.truncf %152 : vector<16x8xf32> to vector<16x8xbf16>
    %154 = vector.extract_strided_slice %132 {offsets = [0, 0], sizes = [8, 8], strides = [1, 1]} : vector<8x32xbf16> to vector<8x8xbf16>
    %cst_42 = arith.constant dense<0.000000e+00> : vector<16x8xf32>
    %155 = tpu.matmul %153, %154, %cst_42 {dimension_numbers = #tpu.dot_dimension_numbers<[1], [0], [0], [1], [0, 0, 1, 1], [], []>} : vector<16x8xbf16>, vector<8x8xbf16>, vector<16x8xf32> -> vector<16x8xf32>
    %156 = arith.truncf %155 : vector<16x8xf32> to vector<16x8xbf16>
    %157 = vector.extract_strided_slice %20 {offsets = [0, 0], sizes = [8, 32], strides = [1, 1]} : vector<32x32xf32> to vector<8x32xf32>
    %158 = arith.truncf %157 : vector<8x32xf32> to vector<8x32xbf16>
    %cst_43 = arith.constant dense<0.000000e+00> : vector<16x32xf32>
    %159 = tpu.matmul %156, %158, %cst_43 {dimension_numbers = #tpu.dot_dimension_numbers<[1], [0], [0], [1], [0, 0, 1, 1], [], []>} : vector<16x8xbf16>, vector<8x32xbf16>, vector<16x32xf32> -> vector<16x32xf32>
    %160 = vector.extract_strided_slice %128 {offsets = [0, 8], sizes = [16, 8], strides = [1, 1]} : vector<16x32xbf16> to vector<16x8xbf16>
    %161 = vector.extract_strided_slice %130 {offsets = [0, 8], sizes = [8, 8], strides = [1, 1]} : vector<8x32xbf16> to vector<8x8xbf16>
    %cst_44 = arith.constant dense<0.000000e+00> : vector<16x8xf32>
    %162 = tpu.matmul %160, %161, %cst_44 {dimension_numbers = #tpu.dot_dimension_numbers<[1], [1], [0], [0], [0, 0, 1, 0], [], []>} : vector<16x8xbf16>, vector<8x8xbf16>, vector<16x8xf32> -> vector<16x8xf32>
    %cst_45 = arith.constant -1.000000e+09 : f32
    %163 = vector.broadcast %cst_45 : f32 to vector<16x8xf32>
    %164 = arith.select %137, %163, %162 : vector<16x8xi1>, vector<16x8xf32>
    %cst_46 = arith.constant dense<0xFF800000> : vector<16xf32>
    %165 = vector.multi_reduction <maximumf>, %164, %cst_46 [1] : vector<16x8xf32> to vector<16xf32>
    %166 = vector.shape_cast %165 : vector<16xf32> to vector<16x1xf32>
    %167 = vector.broadcast %166 : vector<16x1xf32> to vector<16x8xf32>
    %168 = arith.subf %164, %167 : vector<16x8xf32>
    %169 = math.exp %168 : vector<16x8xf32>
    %cst_47 = arith.constant dense<0.000000e+00> : vector<16xf32>
    %170 = vector.multi_reduction <add>, %169, %cst_47 [1] : vector<16x8xf32> to vector<16xf32>
    %171 = vector.shape_cast %170 : vector<16xf32> to vector<16x1xf32>
    %172 = tpu.reciprocal %171 {approx = true} : vector<16x1xf32> -> vector<16x1xf32>
    %173 = vector.broadcast %172 : vector<16x1xf32> to vector<16x8xf32>
    %174 = arith.mulf %169, %173 : vector<16x8xf32>
    %175 = arith.truncf %174 : vector<16x8xf32> to vector<16x8xbf16>
    %176 = vector.extract_strided_slice %132 {offsets = [0, 8], sizes = [8, 8], strides = [1, 1]} : vector<8x32xbf16> to vector<8x8xbf16>
    %cst_48 = arith.constant dense<0.000000e+00> : vector<16x8xf32>
    %177 = tpu.matmul %175, %176, %cst_48 {dimension_numbers = #tpu.dot_dimension_numbers<[1], [0], [0], [1], [0, 0, 1, 1], [], []>} : vector<16x8xbf16>, vector<8x8xbf16>, vector<16x8xf32> -> vector<16x8xf32>
    %178 = arith.truncf %177 : vector<16x8xf32> to vector<16x8xbf16>
    %179 = vector.extract_strided_slice %20 {offsets = [8, 0], sizes = [8, 32], strides = [1, 1]} : vector<32x32xf32> to vector<8x32xf32>
    %180 = arith.truncf %179 : vector<8x32xf32> to vector<8x32xbf16>
    %cst_49 = arith.constant dense<0.000000e+00> : vector<16x32xf32>
    %181 = tpu.matmul %178, %180, %cst_49 {dimension_numbers = #tpu.dot_dimension_numbers<[1], [0], [0], [1], [0, 0, 1, 1], [], []>} : vector<16x8xbf16>, vector<8x32xbf16>, vector<16x32xf32> -> vector<16x32xf32>
    %182 = vector.extract_strided_slice %128 {offsets = [0, 16], sizes = [16, 8], strides = [1, 1]} : vector<16x32xbf16> to vector<16x8xbf16>
    %183 = vector.extract_strided_slice %130 {offsets = [0, 16], sizes = [8, 8], strides = [1, 1]} : vector<8x32xbf16> to vector<8x8xbf16>
    %cst_50 = arith.constant dense<0.000000e+00> : vector<16x8xf32>
    %184 = tpu.matmul %182, %183, %cst_50 {dimension_numbers = #tpu.dot_dimension_numbers<[1], [1], [0], [0], [0, 0, 1, 0], [], []>} : vector<16x8xbf16>, vector<8x8xbf16>, vector<16x8xf32> -> vector<16x8xf32>
    %cst_51 = arith.constant -1.000000e+09 : f32
    %185 = vector.broadcast %cst_51 : f32 to vector<16x8xf32>
    %186 = arith.select %137, %185, %184 : vector<16x8xi1>, vector<16x8xf32>
    %cst_52 = arith.constant dense<0xFF800000> : vector<16xf32>
    %187 = vector.multi_reduction <maximumf>, %186, %cst_52 [1] : vector<16x8xf32> to vector<16xf32>
    %188 = vector.shape_cast %187 : vector<16xf32> to vector<16x1xf32>
    %189 = vector.broadcast %188 : vector<16x1xf32> to vector<16x8xf32>
    %190 = arith.subf %186, %189 : vector<16x8xf32>
    %191 = math.exp %190 : vector<16x8xf32>
    %cst_53 = arith.constant dense<0.000000e+00> : vector<16xf32>
    %192 = vector.multi_reduction <add>, %191, %cst_53 [1] : vector<16x8xf32> to vector<16xf32>
    %193 = vector.shape_cast %192 : vector<16xf32> to vector<16x1xf32>
    %194 = tpu.reciprocal %193 {approx = true} : vector<16x1xf32> -> vector<16x1xf32>
    %195 = vector.broadcast %194 : vector<16x1xf32> to vector<16x8xf32>
    %196 = arith.mulf %191, %195 : vector<16x8xf32>
    %197 = arith.truncf %196 : vector<16x8xf32> to vector<16x8xbf16>
    %198 = vector.extract_strided_slice %132 {offsets = [0, 16], sizes = [8, 8], strides = [1, 1]} : vector<8x32xbf16> to vector<8x8xbf16>
    %cst_54 = arith.constant dense<0.000000e+00> : vector<16x8xf32>
    %199 = tpu.matmul %197, %198, %cst_54 {dimension_numbers = #tpu.dot_dimension_numbers<[1], [0], [0], [1], [0, 0, 1, 1], [], []>} : vector<16x8xbf16>, vector<8x8xbf16>, vector<16x8xf32> -> vector<16x8xf32>
    %200 = arith.truncf %199 : vector<16x8xf32> to vector<16x8xbf16>
    %201 = vector.extract_strided_slice %20 {offsets = [16, 0], sizes = [8, 32], strides = [1, 1]} : vector<32x32xf32> to vector<8x32xf32>
    %202 = arith.truncf %201 : vector<8x32xf32> to vector<8x32xbf16>
    %cst_55 = arith.constant dense<0.000000e+00> : vector<16x32xf32>
    %203 = tpu.matmul %200, %202, %cst_55 {dimension_numbers = #tpu.dot_dimension_numbers<[1], [0], [0], [1], [0, 0, 1, 1], [], []>} : vector<16x8xbf16>, vector<8x32xbf16>, vector<16x32xf32> -> vector<16x32xf32>
    %204 = vector.extract_strided_slice %128 {offsets = [0, 24], sizes = [16, 8], strides = [1, 1]} : vector<16x32xbf16> to vector<16x8xbf16>
    %205 = vector.extract_strided_slice %130 {offsets = [0, 24], sizes = [8, 8], strides = [1, 1]} : vector<8x32xbf16> to vector<8x8xbf16>
    %cst_56 = arith.constant dense<0.000000e+00> : vector<16x8xf32>
    %206 = tpu.matmul %204, %205, %cst_56 {dimension_numbers = #tpu.dot_dimension_numbers<[1], [1], [0], [0], [0, 0, 1, 0], [], []>} : vector<16x8xbf16>, vector<8x8xbf16>, vector<16x8xf32> -> vector<16x8xf32>
    %cst_57 = arith.constant -1.000000e+09 : f32
    %207 = vector.broadcast %cst_57 : f32 to vector<16x8xf32>
    %208 = arith.select %137, %207, %206 : vector<16x8xi1>, vector<16x8xf32>
    %cst_58 = arith.constant dense<0xFF800000> : vector<16xf32>
    %209 = vector.multi_reduction <maximumf>, %208, %cst_58 [1] : vector<16x8xf32> to vector<16xf32>
    %210 = vector.shape_cast %209 : vector<16xf32> to vector<16x1xf32>
    %211 = vector.broadcast %210 : vector<16x1xf32> to vector<16x8xf32>
    %212 = arith.subf %208, %211 : vector<16x8xf32>
    %213 = math.exp %212 : vector<16x8xf32>
    %cst_59 = arith.constant dense<0.000000e+00> : vector<16xf32>
    %214 = vector.multi_reduction <add>, %213, %cst_59 [1] : vector<16x8xf32> to vector<16xf32>
    %215 = vector.shape_cast %214 : vector<16xf32> to vector<16x1xf32>
    %216 = tpu.reciprocal %215 {approx = true} : vector<16x1xf32> -> vector<16x1xf32>
    %217 = vector.broadcast %216 : vector<16x1xf32> to vector<16x8xf32>
    %218 = arith.mulf %213, %217 : vector<16x8xf32>
    %219 = arith.truncf %218 : vector<16x8xf32> to vector<16x8xbf16>
    %220 = vector.extract_strided_slice %132 {offsets = [0, 24], sizes = [8, 8], strides = [1, 1]} : vector<8x32xbf16> to vector<8x8xbf16>
    %cst_60 = arith.constant dense<0.000000e+00> : vector<16x8xf32>
    %221 = tpu.matmul %219, %220, %cst_60 {dimension_numbers = #tpu.dot_dimension_numbers<[1], [0], [0], [1], [0, 0, 1, 1], [], []>} : vector<16x8xbf16>, vector<8x8xbf16>, vector<16x8xf32> -> vector<16x8xf32>
    %222 = arith.truncf %221 : vector<16x8xf32> to vector<16x8xbf16>
    %223 = vector.extract_strided_slice %20 {offsets = [24, 0], sizes = [8, 32], strides = [1, 1]} : vector<32x32xf32> to vector<8x32xf32>
    %224 = arith.truncf %223 : vector<8x32xf32> to vector<8x32xbf16>
    %cst_61 = arith.constant dense<0.000000e+00> : vector<16x32xf32>
    %225 = tpu.matmul %222, %224, %cst_61 {dimension_numbers = #tpu.dot_dimension_numbers<[1], [0], [0], [1], [0, 0, 1, 1], [], []>} : vector<16x8xbf16>, vector<8x32xbf16>, vector<16x32xf32> -> vector<16x32xf32>
    %226 = arith.addf %159, %181 : vector<16x32xf32>
    %227 = arith.addf %203, %225 : vector<16x32xf32>
    %228 = arith.addf %226, %227 : vector<16x32xf32>
    %229 = vector.broadcast %21 : vector<1x32xf32> to vector<16x32xf32>
    %230 = arith.addf %228, %229 : vector<16x32xf32>
    %c16_62 = arith.constant 16 : index
    %c0_63 = arith.constant 0 : index
    %231 = vector.load %arg3[%c16_62, %c0_63] : memref<32x32xf32, #tpu.memory_space<vmem>>, vector<16x32xf32>
    tpu.vector_store %arg3[%c16_62, %c0_63], %230 {strides = array<i32>} : memref<32x32xf32, #tpu.memory_space<vmem>>, vector<16x32xf32>,
    return
  }
}

</mosaic_0001>

<bundles_post_ra>
// kernel: tpu_custom_call.1
= control target key start
LH: loop header
LB: loop body
LE: loop exit
PB: predicated region body
PF: predicated region fallthrough
CT: control target
= control target key end

     0   :  { %s1494_s0 = inlined_call_operand.vmem [shape: bf16[64,32], index: 0, kind: input, shape index: {}]   ;;  %s1495_s1 = inlined_call_operand.vmem [shape: f32[32,1], index: 1, kind: input, shape index: {}]   ;;  %s1496_s2 = inlined_call_operand.vmem [shape: f32[65,128], index: 2, kind: input, shape index: {}]   ;;  %s1497_s3 = inlined_call_operand.hbm [shape: f32[32,32], index: 3, kind: output, shape index: {}]  }
   0x1   :  { %v1027_v0 = vld [vmem:[%s1494_s0 + $0x18] sm:$0xff]  ;;  %v1026_v1 = vld [vmem:[%s1494_s0 + $0x10] sm:$0xff]  ;;  %v1186_v5 = vld [vmem:[%s1496_s2] sm:$0xff] }
   0x2   :  { %70 = vmatpush.bf16.msra.mxu0 %v1027_v0  ;;  %v1174_v2 = vld [vmem:[%s1496_s2 + $0x10] sm:$0xff]  ;;  %v1179_v3 = vld [vmem:[%s1496_s2 + $0x18] sm:$0xff]  ;;  %v1191_v6 = vld [vmem:[%s1496_s2 + $0x8] sm:$0xff] }
   0x3   :  { %v86_v4 = vpack.c.bf16 %v1179_v3, %v1174_v2 }
   0x4   :  { %8 = vsyncpa [#allocation3], 0  ;;  %s1133_s24 = smov 96   ;;  %v1025_v7 = vld [vmem:[%s1494_s0 + $0x8] sm:$0xff]  ;;  %v85_v8 = vpack.c.bf16 %v1191_v6, %v1186_v5  ;;  %v1024_v9 = vld [vmem:[%s1494_s0] sm:$0xff]  ;;  %vm59_vm0 = vcmask 523264  }
   0x5   :  { %120 = vrot.lane.b32.xlu0 %v86_v4, %s1133_s24  ;;  %101 = vmatpush.bf16.msra.mxu1 %v86_v4  ;;  %v20_v10 = vld [vmem:[%s1496_s2 + $0x20] sm:$0xff]  ;;  %v21_v11 = vld [vmem:[%s1496_s2 + $0x28] sm:$0xff]  ;;  %v22_v13 = vld [vmem:[%s1496_s2 + $0x30] sm:$0xff]  ;;  %vm88_vm1 = vcmask 261120   ;;  %v1135_v38 = vmov 0   ;;  %vm176_vm2 = vcmask 64512  }
   0x6   :  { %71 = vmatpush.bf16.msra.mxu0 %v1026_v1  ;;  %v33_v12 = vpack.c.bf16 %v21_v11, %v20_v10  ;;  %v23_v14 = vld [vmem:[%s1496_s2 + $0x38] sm:$0xff]  ;;  %v1219_v18 = vld [vmem:[%s1496_s2 + $0x40] ss:$0 sm:$0xff]  ;;  %s1134_s2 = smov 120   ;;  %v158_v35 = vld [vmem:[%s1495_s1 + $0x8] sm:$0xff]  ;;  %1041 = vset.pattern.permute.xlu0 %v1135_v38  ;;  %s1136_s15 = smov 88  }
   0x7   :  { %v34_v15 = vpack.c.bf16 %v23_v14, %v22_v13  ;;  %125 = vrot.lane.b32.xlu1 %v1219_v18, %s1133_s24  ;;  %v157_v36 = vld [vmem:[%s1495_s1] sm:$0xff]  ;;  %1040 = vset.pattern.permute.xlu2 %v1135_v38  ;;  %s1137_s16 = smov 112   ;;  %s1138_s17 = smov 104   ;;  %vm230_vm5 = vcmask 1043456  }
   0x8   :  { %s1139_s18 = smov 32   ;;  %s1140_s19 = smov 72  }
   0x9   :  { %102 = vmatpush.bf16.msra.mxu1 %v85_v8  ;;  %s1141_s20 = smov 80   ;;  %s966_s28 = sshll.u32 %s1497_s3, 4  ;;  %s967_s28 = int_to_ptr.hbm [resolvable:$true] %s966_s28 }
   0xa   :  { %72 = vmatpush.bf16.msra.mxu0 %v1025_v7  ;;  %s1143_s29 = smov 128   ;;  %s1144_s30 = smov 8  }
   0xc   :  { %996 = vmatmul.msk.bf16.vlgmr.msra.gmra.mxu1 %vm88_vm1, %v1024_v9 }
   0xd   :  { %118 = vrot.lane.b32.xlu0 %v85_v8, %s1133_s24 }
   0xe   :  { %73 = vmatpush.bf16.msra.mxu0 %v1024_v9 }
  0x11   :  { %994 = vmatmul.msk.bf16.vlgmr.msra.gmra.mxu0 %vm59_vm0, %v33_v12 }
  0x15   :  { %166 = vperm.xlu0 %1041, %v158_v35  }
  0x1c   :  { %997 = vmatmul.msk.bf16.gmra.mxu1 %vm88_vm1, %v1025_v7 }
  0x21   :  { %995 = vmatmul.msk.bf16.gmra.mxu0 %vm59_vm0, %v34_v15 }
  0x77   :  { %v121_v16 = vpop.permute.xlu0 %120 }
  0x78   :  { %140 = vmatpush.bf16.msra.mxu2 %v121_v16 }
  0x79   :  { %v1232_v34 = vpop.permute.xlu1 %125 }
  0x7f   :  { %v119_v17 = vpop.permute.xlu0 %118 }
  0x80   :  { %141 = vmatpush.bf16.msra.mxu2 %v119_v17 }
  0x87   :  { %v1259_v54 = vpop.permute.xlu0 %166 }
  0x88   :  { %vm170_vm4 = vcmp.eq.f32.partialorder %v1259_v54, 0.0 }
  0x89   :  { %v104_v25 = vpop.f32.mrf.mxu1 }
  0x8a   :  { %v105_v27 = vadd.f32 %v1219_v18, %v104_v25 }
  0x8c   :  { %v153_v29 = vpack.c.bf16 %v105_v27, %v105_v27 }
  0x8e   :  { %v75_v19 = vpop.f32.mrf.mxu0  ;;  %v173_v31 = vunpack.c.l.b16 %v153_v29 }
  0x91   :  { %v106_v26 = vpop.f32.mrf.mxu1 }
  0x92   :  { %v107_v28 = vadd.f32 %v1219_v18, %v106_v26 }
  0x94   :  { %v154_v30 = vpack.c.bf16 %v107_v28, %v107_v28 }
  0x96   :  { %v77_v20 = vpop.f32.mrf.mxu0  ;;  %v174_v32 = vunpack.c.l.b16 %v154_v30 }
  0x97   :  { %v114_v21 = vpack.c.bf16 %v77_v20, %v75_v19 }
  0x98   :  { %v1228_v33 = vpack.c.b16 %v174_v32, %v173_v31 }
  0x99   :  { %998 = vmatmul.msk.bf16.vlgmr.msra.gmra.mxu2 %vm88_vm1, %v114_v21  ;;  %v1247_v47 = vpop.f32.mrf.mxu1 }
  0x9a   :  { %250 = vrot.lane.b32.xlu2 %v1228_v33, %s1134_s2 }
  0x9e   :  { %v80_v22 = vpop.f32.mrf.mxu0 }
  0xa1   :  { %v1249_v48 = vpop.f32.mrf.mxu1 }
  0xa2   :  { %161 = vperm.xlu2 %1040, %v157_v36  }
  0xa6   :  { %v82_v23 = vpop.f32.mrf.mxu0 }
  0xa7   :  { %v115_v24 = vpack.c.bf16 %v82_v23, %v80_v22 }
  0xa9   :  { %999 = vmatmul.msk.bf16.gmra.mxu2 %vm88_vm1, %v115_v24 }
  0xf4   :  { %v251_v46 = vpop.permute.xlu2 %250 }
  0xfc   :  { %v1251_v49 = vpop.permute.xlu2 %161 }
  0xfd   :  { %vm169_vm3 = vcmp.eq.f32.partialorder %v1251_v49, 0.0  ;;  %v249_v49 = vpack.c.bf16 %v1186_v5, %v1186_v5  ;;  %v578_v5 = vld [vmem:[%s1495_s1 + $0x18] sm:$0xff] }
 0x11c   :  { %v143_v37 = vpop.f32.mrf.mxu2 }
 0x11d   :  { %v144_v39 = vadd.f32 %v143_v37, %v1232_v34 }
 0x11f   :  { %v155_v40 = vpack.c.bf16 %v144_v39, %v144_v39 }
 0x121   :  { %v253_v41 = vunpack.c.l.b16 %v155_v40  ;;  %v181_v42 = vsel %vm176_vm2, %v155_v40, 0 }
 0x122   :  { %190 = vmatpush.bf16.xpose.msra.mxu3 %v181_v42 }
 0x123   :  { %v254_v43 = vpack.c.b16 %v253_v41, %v253_v41 }
 0x124   :  { %v1254_v51 = vpop.f32.mrf.mxu2 }
 0x125   :  { %255 = vrot.lane.b32.xlu1 %v254_v43, %s1134_s2 }
 0x129   :  { %1000 = vmatmul.msk.bf16.vlgmr.msra.gmra.mxu3 %vm176_vm2, %v1228_v33 }
 0x12c   :  { %v148_v58 = vpop.f32.mrf.mxu2 }
 0x12d   :  { %v149_v59 = vadd.f32 %v148_v58, %v1232_v34 }
 0x12f   :  { %v156_v60 = vpack.c.bf16 %v149_v59, %v149_v59 }
 0x131   :  { %v223_v61 = vunpack.c.l.b16 %v156_v60 }
 0x133   :  { %v1266_v62 = vpack.c.b16 %v223_v61, %v223_v61 }
 0x197   :  { %v256_v44 = vpop.permute.xlu1 %255 }
 0x198   :  { %v261_v45 = vsel %vm176_vm2, %v256_v44, 0 }
 0x199   :  { %270 = vmatpush.bf16.xpose.msrb.mxu1 %v261_v45 }
 0x1a0   :  { %1002 = vmatmul.msk.bf16.vlgmr.msrb.gmra.mxu1 %vm176_vm2, %v251_v46 }
 0x1ac   :  { %v192_v63 = vpop.f32.mrf.mxu3 }
 0x1ad   :  { %v197_v0 = vsel %vm169_vm3, -1e+09, %v192_v63 }
 0x1ae   :  { %v199_v1 = vsel %vm176_vm2, %v197_v0, -inf }
 0x1b4   :  { %v194_v23 = vpop.f32.mrf.mxu3 }
 0x1b5   :  { %v198_v24 = vsel %vm170_vm4, -1e+09, %v194_v23 }
 0x1b6   :  { %v202_v25 = vsel %vm176_vm2, %v198_v24, -inf }
 0x21d   :  { %v272_v50 = vpop.f32.mrf.mxu1 }
 0x21e   :  { %v277_v52 = vsel %vm169_vm3, -1e+09, %v272_v50 }
 0x21f   :  { %v279_v53 = vsel %vm176_vm2, %v277_v52, -inf }
 0x220   :  { %280 = vmax.xlane.f32.xlu1 %v279_v53 }
 0x225   :  { %v274_v55 = vpop.f32.mrf.mxu1 }
 0x226   :  { %v278_v56 = vsel %vm170_vm4, -1e+09, %v274_v55 }
 0x227   :  { %v282_v57 = vsel %vm176_vm2, %v278_v56, -inf }
 0x228   :  { %283 = vmax.xlane.f32.xlu2 %v282_v57 }
 0x239   :  { %302 = vrot.lane.b32.xlu1 %v1266_v62, %s1136_s15 }
 0x240   :  { %351 = vrot.lane.b32.xlu2 %v254_v43, %s1137_s16 }
 0x241   :  { %424 = vrot.lane.b32.xlu1 %v254_v43, %s1138_s17 }
 0x26b   :  { %200 = vmax.xlane.f32.xlu1 %v199_v1 }
 0x293   :  { %v281_v4 = vpop.xlane.xlu1 %280 }
 0x294   :  { %v285_v7 = vsub.f32 %v277_v52, %v281_v4  ;;  %v1295_v52 = vpop.f32.mrf.mxu2 }
 0x296   :  { %v287_v8 = vmul.f32 1.442695, %v285_v7 }
 0x298   :  { %1043 = vpow2.f32 %v287_v8 }
 0x29b   :  { %v284_v9 = vpop.xlane.xlu2 %283 }
 0x29c   :  { %v286_v10 = vsub.f32 %v278_v56, %v284_v9 }
 0x29e   :  { %v1044_v11 = vpop.eup %1043  ;;  %v289_v12 = vmul.f32 1.442695, %v286_v10 }
 0x29f   :  { %v291_v13 = vsel %vm176_vm2, %v1044_v11, 0.0 }
 0x2a0   :  { %1045 = vpow2.f32 %v289_v12  ;;  %292 = vadd.xlane.f32.xlu0 %v291_v13 }
 0x2a3   :  { %v352_v14 = vpop.permute.xlu2 %351 }
 0x2a4   :  { %v357_v15 = vsel %vm176_vm2, %v352_v14, 0  ;;  %v325_v14 = vpack.c.bf16 %v1191_v6, %v1191_v6 }
 0x2a5   :  { %366 = vmatpush.bf16.xpose.msrb.mxu0 %v357_v15 }
 0x2a6   :  { %v1046_v16 = vpop.eup %1045 }
 0x2a7   :  { %v294_v17 = vsel %vm176_vm2, %v1046_v16, 0.0 }
 0x2a8   :  { %295 = vadd.xlane.f32.xlu2 %v294_v17 }
 0x2ab   :  { %v303_v19 = vpop.permute.xlu1 %302 }
 0x2ac   :  { %v308_v20 = vsel %vm230_vm5, %v303_v19, 0 }
 0x2ad   :  { %317 = vmatpush.bf16.msrb.mxu2 %v308_v20 }
 0x2b3   :  { %v425_v21 = vpop.permute.xlu1 %424 }
 0x2b4   :  { %v430_v22 = vsel %vm176_vm2, %v425_v21, 0  ;;  %349 = vrot.lane.b32.xlu0 %v1228_v33, %s1137_s16 }
 0x2b5   :  { %439 = vmatpush.bf16.xpose.msra.mxu2 %v430_v22 }
 0x2c0   :  { %422 = vrot.lane.b32.xlu2 %v1228_v33, %s1138_s17 }
 0x2de   :  { %v201_v26 = vpop.xlane.xlu1 %200  ;;  %203 = vmax.xlane.f32.xlu0 %v202_v25 }
 0x2df   :  { %v205_v27 = vsub.f32 %v197_v0, %v201_v26 }
 0x2e1   :  { %v207_v28 = vmul.f32 1.442695, %v205_v27  ;;  %v110_v27 = vadd.f32 %v1219_v18, %v1247_v47 }
 0x2e3   :  { %1047 = vpow2.f32 %v207_v28  ;;  %v112_v28 = vadd.f32 %v1219_v18, %v1249_v48 }
 0x2e9   :  { %v1048_v29 = vpop.eup %1047 }
 0x2ea   :  { %v211_v30 = vsel %vm176_vm2, %v1048_v29, 0.0 }
 0x2eb   :  { %212 = vadd.xlane.f32.xlu2 %v211_v30  ;;  %v573_v30 = vpack.c.bf16 %v110_v27, %v110_v27 }
 0x2f2   :  { %225 = vrot.lane.b32.xlu0 %v1266_v62, %s1133_s24 }
 0x313   :  { %v293_v31 = vpop.xlane.xlu0 %292 }
 0x314   :  { %1049 = vrcp.f32 %v293_v31  ;;  %v574_v31 = vpack.c.bf16 %v112_v28, %v112_v28 }
 0x31a   :  { %v1050_v33 = vpop.eup %1049 }
 0x31b   :  { %v296_v32 = vpop.xlane.xlu2 %295  ;;  %v299_v36 = vmul.f32 %v1050_v33, %v1044_v11  ;;  %v594_v33 = vunpack.c.l.b16 %v574_v31 }
 0x31c   :  { %1051 = vrcp.f32 %v296_v32  ;;  %v593_v32 = vunpack.c.l.b16 %v573_v30 }
 0x322   :  { %v1052_v35 = vpop.eup %1051 }
 0x323   :  { %v300_v37 = vmul.f32 %v1052_v35, %v1046_v16  ;;  %v423_v40 = vpop.permute.xlu2 %422 }
 0x325   :  { %v301_v38 = vpack.c.bf16 %v300_v37, %v299_v36  ;;  %v1326_v36 = vpack.c.b16 %v594_v33, %v593_v32 }
 0x326   :  { %v350_v39 = vpop.permute.xlu0 %349 }
 0x327   :  { %1003 = vmatmul.msk.bf16.vlgmr.msrb.gmra.mxu2 %vm176_vm2, %v301_v38  ;;  %1005 = vmatmul.msk.bf16.vlgmr.msrb.gmra.mxu0 %vm176_vm2, %v350_v39  ;;  %v577_v39 = vld [vmem:[%s1495_s1 + $0x10] sm:$0xff]  ;;  %s1142_s1 = smov [#allocation2]  }
 0x337   :  { %1007 = vmatmul.msk.bf16.vlgmr.msra.gmra.mxu2 %vm176_vm2, %v423_v40 }
 0x351   :  { %v204_v41 = vpop.xlane.xlu0 %203 }
 0x352   :  { %v206_v42 = vsub.f32 %v198_v24, %v204_v41 }
 0x354   :  { %v209_v43 = vmul.f32 1.442695, %v206_v42 }
 0x356   :  { %1053 = vpow2.f32 %v209_v43 }
 0x35c   :  { %v1054_v44 = vpop.eup %1053 }
 0x35d   :  { %v214_v45 = vsel %vm176_vm2, %v1054_v44, 0.0 }
 0x35e   :  { %215 = vadd.xlane.f32.xlu1 %v214_v45  ;;  %v213_v8 = vpop.xlane.xlu2 %212 }
 0x35f   :  { %1055 = vrcp.f32 %v213_v8 }
 0x364   :  { %v226_v46 = vpop.permute.xlu0 %225 }
 0x365   :  { %v232_v50 = vsel %vm230_vm5, %v226_v46, 0  ;;  %v1056_v10 = vpop.eup %1055 }
 0x366   :  { %241 = vmatpush.bf16.msrb.mxu3 %v232_v50  ;;  %v219_v12 = vmul.f32 %v1056_v10, %v1048_v29 }
 0x3a4   :  { %v368_v53 = vpop.f32.mrf.mxu0 }
 0x3a5   :  { %v373_v55 = vsel %vm169_vm3, -1e+09, %v368_v53 }
 0x3a6   :  { %v375_v56 = vsel %vm176_vm2, %v373_v55, -inf }
 0x3a7   :  { %376 = vmax.xlane.f32.xlu2 %v375_v56 }
 0x3aa   :  { %v319_v57 = vpop.f32.mrf.mxu2 }
 0x3ac   :  { %v370_v58 = vpop.f32.mrf.mxu0 }
 0x3ad   :  { %v374_v59 = vsel %vm170_vm4, -1e+09, %v370_v58 }
 0x3ae   :  { %v378_v60 = vsel %vm176_vm2, %v374_v59, -inf }
 0x3af   :  { %379 = vmax.xlane.f32.xlu1 %v378_v60  ;;  %v146_v60 = vadd.f32 %v1254_v51, %v1232_v34 }
 0x3b2   :  { %v321_v61 = vpop.f32.mrf.mxu2 }
 0x3b3   :  { %v324_v63 = vpack.c.bf16 %v321_v61, %v319_v57  ;;  %v575_v61 = vpack.c.bf16 %v146_v60, %v146_v60 }
 0x3b5   :  { %v670_v10 = vunpack.c.l.b16 %v575_v61 }
 0x3ba   :  { %v441_v0 = vpop.f32.mrf.mxu2 }
 0x3bb   :  { %v446_v6 = vsel %vm169_vm3, -1e+09, %v441_v0 }
 0x3bc   :  { %v448_v25 = vsel %vm176_vm2, %v446_v6, -inf }
 0x3c2   :  { %v443_v1 = vpop.f32.mrf.mxu2 }
 0x3c3   :  { %v447_v4 = vsel %vm170_vm4, -1e+09, %v443_v1 }
 0x3c4   :  { %v451_v7 = vsel %vm176_vm2, %v447_v4, -inf }
 0x3c5   :  { %452 = vmax.xlane.f32.xlu1 %v451_v7 }
 0x3d1   :  { %v216_v9 = vpop.xlane.xlu1 %215 }
 0x3d2   :  { %1057 = vrcp.f32 %v216_v9 }
 0x3d8   :  { %v1058_v11 = vpop.eup %1057 }
 0x3d9   :  { %v220_v13 = vmul.f32 %v1058_v11, %v1054_v44  ;;  %v671_v11 = vpack.c.b16 %v670_v10, %v670_v10 }
 0x3db   :  { %v221_v15 = vpack.c.bf16 %v220_v13, %v219_v12 }
 0x3dd   :  { %1001 = vmatmul.msk.bf16.vlgmr.msrb.gmra.mxu3 %vm176_vm2, %v221_v15 }
 0x3de   :  { %327 = vrot.lane.b32.xlu1 %v325_v14, %s1139_s18 }
 0x41a   :  { %v377_v54 = vpop.xlane.xlu2 %376 }
 0x41b   :  { %v381_v16 = vsub.f32 %v373_v55, %v377_v54 }
 0x41d   :  { %v383_v17 = vmul.f32 1.442695, %v381_v16 }
 0x41f   :  { %1059 = vpow2.f32 %v383_v17 }
 0x422   :  { %v380_v19 = vpop.xlane.xlu1 %379 }
 0x423   :  { %v382_v20 = vsub.f32 %v374_v59, %v380_v19 }
 0x425   :  { %v1060_v21 = vpop.eup %1059  ;;  %v385_v22 = vmul.f32 1.442695, %v382_v20 }
 0x426   :  { %v387_v23 = vsel %vm176_vm2, %v1060_v21, 0.0 }
 0x427   :  { %1061 = vpow2.f32 %v385_v22  ;;  %388 = vadd.xlane.f32.xlu2 %v387_v23 }
 0x42d   :  { %v1062_v24 = vpop.eup %1061 }
 0x42e   :  { %v390_v26 = vsel %vm176_vm2, %v1062_v24, 0.0 }
 0x42f   :  { %449 = vmax.xlane.f32.xlu2 %v448_v25  ;;  %391 = vadd.xlane.f32.xlu0 %v390_v26 }
 0x438   :  { %v453_v29 = vpop.xlane.xlu1 %452 }
 0x439   :  { %v455_v48 = vsub.f32 %v447_v4, %v453_v29  ;;  %v600_v4 = vsel %vm176_vm2, %v575_v61, 0 }
 0x443   :  { %471 = vrot.lane.b32.xlu0 %v1266_v62, %s1140_s19 }
 0x447   :  { %398 = vrot.lane.b32.xlu2 %v1266_v62, %s1141_s20  ;;  %v458_v62 = vmul.f32 1.442695, %v455_v48 }
 0x449   :  { %1063 = vpow2.f32 %v458_v62 }
 0x44b   :  { %519 = vrot.lane.b32.xlu0 %v249_v49, %s1139_s18 }
 0x44f   :  { %v1064_v37 = vpop.eup %1063 }
 0x450   :  { %v328_v35 = vpop.permute.xlu1 %327  ;;  %v463_v38 = vsel %vm176_vm2, %v1064_v37, 0.0 }
 0x451   :  { %v333_v47 = vsel %vm230_vm5, %v328_v35, 0 }
 0x452   :  { %342 = vmatpush.bf16.msra.mxu3 %v333_v47 }
 0x453   :  { %667 = vrot.lane.b32.xlu0 %v1326_v36, %s1134_s2 }
 0x455   :  { %1004 = vmatmul.msk.bf16.vlgmr.msra.gmra.mxu3 %vm176_vm2, %v324_v63 }
 0x45b   :  { %586 = vperm.xlu0 %1041, %v578_v5  }
 0x460   :  { %v243_v63 = vpop.f32.mrf.mxu3 }
 0x468   :  { %v245_v7 = vpop.f32.mrf.mxu3 }
 0x469   :  { %v248_v51 = vpack.c.bf16 %v245_v7, %v243_v63 }
 0x470   :  { %464 = vadd.xlane.f32.xlu2 %v463_v38 }
 0x488   :  { %581 = vperm.xlu2 %1040, %v577_v39  }
 0x49a   :  { %v389_v40 = vpop.xlane.xlu2 %388 }
 0x49b   :  { %1065 = vrcp.f32 %v389_v40 }
 0x4a1   :  { %v1066_v45 = vpop.eup %1065 }
 0x4a2   :  { %v450_v41 = vpop.xlane.xlu2 %449  ;;  %v392_v42 = vpop.xlane.xlu0 %391  ;;  %v395_v50 = vmul.f32 %v1066_v45, %v1060_v21 }
 0x4a3   :  { %v454_v43 = vsub.f32 %v446_v6, %v450_v41  ;;  %1067 = vrcp.f32 %v392_v42  ;;  %v494_v42 = vpack.c.bf16 %v1179_v3, %v1179_v3 }
 0x4a5   :  { %v456_v44 = vmul.f32 1.442695, %v454_v43  ;;  %v151_v43 = vadd.f32 %v1295_v52, %v1232_v34 }
 0x4a7   :  { %1069 = vpow2.f32 %v456_v44  ;;  %v421_v44 = vpack.c.bf16 %v1174_v2, %v1174_v2  ;;  %v576_v45 = vpack.c.bf16 %v151_v43, %v151_v43 }
 0x4a9   :  { %v1068_v46 = vpop.eup %1067 }
 0x4aa   :  { %v396_v53 = vmul.f32 %v1068_v46, %v1062_v24  ;;  %v399_v55 = vpop.permute.xlu2 %398  ;;  %v642_v46 = vunpack.c.l.b16 %v576_v45 }
 0x4ab   :  { %v404_v56 = vsel %vm230_vm5, %v399_v55, 0 }
 0x4ac   :  { %v397_v57 = vpack.c.bf16 %v396_v53, %v395_v50  ;;  %413 = vmatpush.bf16.msra.mxu1 %v404_v56  ;;  %v1403_v50 = vpack.c.b16 %v642_v46, %v642_v46 }
 0x4ad   :  { %v1070_v58 = vpop.eup %1069 }
 0x4ae   :  { %v460_v59 = vsel %vm176_vm2, %v1070_v58, 0.0 }
 0x4af   :  { %461 = vadd.xlane.f32.xlu1 %v460_v59  ;;  %1006 = vmatmul.msk.bf16.vlgmr.msra.gmra.mxu1 %vm176_vm2, %v397_v57 }
 0x4b5   :  { %v472_v0 = vpop.permute.xlu0 %471 }
 0x4b6   :  { %v477_v1 = vsel %vm230_vm5, %v472_v0, 0 }
 0x4b7   :  { %486 = vmatpush.bf16.msrb.mxu3 %v477_v1 }
 0x4bb   :  { %609 = vmatpush.bf16.xpose.msra.mxu3 %v600_v4 }
 0x4bd   :  { %v520_v8 = vpop.permute.xlu0 %519 }
 0x4be   :  { %v1347_v9 = vsel %vm230_vm5, %v520_v8, 0 }
 0x4bf   :  { %534 = vmatpush.bf16.msrb.mxu1 %v1347_v9 }
 0x4c2   :  { %1010 = vmatmul.msk.bf16.vlgmr.msrb.gmra.mxu1 %vm176_vm2, %v248_v51 }
 0x4c5   :  { %v668_v6 = vpop.permute.xlu0 %667 }
 0x4c8   :  { %672 = vrot.lane.b32.xlu1 %v671_v11, %s1134_s2 }
 0x4cd   :  { %v1386_v48 = vpop.permute.xlu0 %586 }
 0x4ce   :  { %vm590_vm7 = vcmp.eq.f32.partialorder %v1386_v48, 0.0 }
 0x4d8   :  { %v1363_v24 = vpop.f32.mrf.mxu3 }
 0x4e0   :  { %v1365_v25 = vpop.f32.mrf.mxu3 }
 0x4e3   :  { %v465_v12 = vpop.xlane.xlu2 %464 }
 0x4e4   :  { %1071 = vrcp.f32 %v465_v12 }
 0x4ea   :  { %v1072_v14 = vpop.eup %1071 }
 0x4eb   :  { %v469_v54 = vmul.f32 %v1072_v14, %v1064_v37  ;;  %v1377_v30 = vpop.permute.xlu2 %581 }
 0x4ec   :  { %vm589_vm6 = vcmp.eq.f32.partialorder %v1377_v30, 0.0 }
 0x522   :  { %v462_v13 = vpop.xlane.xlu1 %461 }
 0x523   :  { %1073 = vrcp.f32 %v462_v13 }
 0x529   :  { %v1074_v15 = vpop.eup %1073 }
 0x52a   :  { %v468_v16 = vmul.f32 %v1074_v15, %v1070_v58 }
 0x52c   :  { %v470_v17 = vpack.c.bf16 %v469_v54, %v468_v16  ;;  %v1352_v19 = vpop.f32.mrf.mxu1 }
 0x52e   :  { %1008 = vmatmul.msk.bf16.vlgmr.msrb.gmra.mxu3 %vm176_vm2, %v470_v17 }
 0x52f   :  { %752 = vmatpush.bf16.msrb.mxu3 %v333_v47 }
 0x534   :  { %v1355_v20 = vpop.f32.mrf.mxu1 }
 0x535   :  { %v420_v21 = vpack.c.bf16 %v1355_v20, %v1352_v19 }
 0x53a   :  { %v673_v22 = vpop.permute.xlu1 %672 }
 0x53b   :  { %v678_v23 = vsel %vm176_vm2, %v673_v22, 0 }
 0x53c   :  { %687 = vmatpush.bf16.xpose.msra.mxu1 %v678_v23 }
 0x53e   :  { %1012 = vmatmul.msk.bf16.vlgmr.msra.gmra.mxu3 %vm176_vm2, %v1326_v36 }
 0x53f   :  { %v1367_v26 = vpop.f32.mrf.mxu1 }
 0x543   :  { %1014 = vmatmul.msk.bf16.vlgmr.msra.gmra.mxu1 %vm176_vm2, %v668_v6 }
 0x547   :  { %v1371_v28 = vpop.f32.mrf.mxu1 }
 0x5b1   :  { %v1369_v27 = vpop.f32.mrf.mxu3 }
 0x5b9   :  { %v1373_v49 = vpop.f32.mrf.mxu3 }
 0x5ba   :  { %v493_v29 = vpack.c.bf16 %v1373_v49, %v1369_v27 }
 0x5c0   :  { %v689_v31 = vpop.f32.mrf.mxu1 }
 0x5c1   :  { %v694_v32 = vsel %vm589_vm6, -1e+09, %v689_v31  ;;  %v611_v33 = vpop.f32.mrf.mxu3 }
 0x5c2   :  { %v616_v35 = vsel %vm589_vm6, -1e+09, %v611_v33  ;;  %v696_v47 = vsel %vm176_vm2, %v694_v32, -inf }
 0x5c3   :  { %697 = vmax.xlane.f32.xlu0 %v696_v47  ;;  %v618_v5 = vsel %vm176_vm2, %v616_v35, -inf }
 0x5c4   :  { %619 = vmax.xlane.f32.xlu2 %v618_v5 }
 0x5c8   :  { %v691_v62 = vpop.f32.mrf.mxu1 }
 0x5c9   :  { %v695_v37 = vsel %vm590_vm7, -1e+09, %v691_v62  ;;  %v613_v38 = vpop.f32.mrf.mxu3 }
 0x5ca   :  { %v617_v39 = vsel %vm590_vm7, -1e+09, %v613_v38  ;;  %v699_v40 = vsel %vm176_vm2, %v695_v37, -inf }
 0x5cb   :  { %700 = vmax.xlane.f32.xlu1 %v699_v40  ;;  %v621_v41 = vsel %vm176_vm2, %v617_v39, -inf }
 0x5cc   :  { %622 = vmax.xlane.f32.xlu0 %v621_v41  ;;  %v537_v41 = vadd.f32 %v1367_v26, %v1363_v24 }
 0x5e0   :  { %496 = vrot.lane.b32.xlu0 %v494_v42, %s1139_s18 }
 0x5e4   :  { %542 = vrot.lane.b32.xlu1 %v421_v44, %s1139_s18 }
 0x5ec   :  { %719 = vrot.lane.b32.xlu1 %v1403_v50, %s1136_s15 }
 0x5f4   :  { %833 = vrot.lane.b32.xlu1 %v671_v11, %s1138_s17 }
 0x5fc   :  { %761 = vrot.lane.b32.xlu1 %v671_v11, %s1137_s16 }
 0x604   :  { %831 = vrot.lane.b32.xlu1 %v1326_v36, %s1138_s17 }
 0x636   :  { %v698_v3 = vpop.xlane.xlu0 %697 }
 0x637   :  { %v702_v2 = vsub.f32 %v694_v32, %v698_v3  ;;  %v620_v52 = vpop.xlane.xlu2 %619 }
 0x638   :  { %v624_v59 = vsub.f32 %v616_v35, %v620_v52 }
 0x639   :  { %v704_v34 = vmul.f32 1.442695, %v702_v2 }
 0x63a   :  { %v626_v0 = vmul.f32 1.442695, %v624_v59 }
 0x63b   :  { %1075 = vpow2.f32 %v704_v34 }
 0x63e   :  { %v701_v53 = vpop.xlane.xlu1 %700 }
 0x63f   :  { %v703_v55 = vsub.f32 %v695_v37, %v701_v53  ;;  %v623_v56 = vpop.xlane.xlu0 %622 }
 0x640   :  { %v625_v57 = vsub.f32 %v617_v39, %v623_v56 }
 0x641   :  { %v1076_v58 = vpop.eup %1075  ;;  %v706_v60 = vmul.f32 1.442695, %v703_v55 }
 0x642   :  { %v628_v61 = vmul.f32 1.442695, %v625_v57  ;;  %v708_v63 = vsel %vm176_vm2, %v1076_v58, 0.0 }
 0x643   :  { %1077 = vpow2.f32 %v706_v60  ;;  %709 = vadd.xlane.f32.xlu2 %v708_v63 }
 0x644   :  { %1079 = vpow2.f32 %v628_v61 }
 0x645   :  { %1081 = vpow2.f32 %v626_v0 }
 0x649   :  { %v1078_v1 = vpop.eup %1077 }
 0x64a   :  { %v1080_v4 = vpop.eup %1079  ;;  %v711_v7 = vsel %vm176_vm2, %v1078_v1, 0.0 }
 0x64b   :  { %712 = vadd.xlane.f32.xlu2 %v711_v7  ;;  %v633_v8 = vsel %vm176_vm2, %v1080_v4, 0.0  ;;  %v1082_v51 = vpop.eup %1081 }
 0x64c   :  { %634 = vadd.xlane.f32.xlu0 %v633_v8  ;;  %v630_v11 = vsel %vm176_vm2, %v1082_v51, 0.0 }
 0x652   :  { %v497_v10 = vpop.permute.xlu0 %496 }
 0x653   :  { %v502_v12 = vsel %vm230_vm5, %v497_v10, 0  ;;  %631 = vadd.xlane.f32.xlu2 %v630_v11 }
 0x654   :  { %511 = vmatpush.bf16.msra.mxu0 %v502_v12 }
 0x656   :  { %v543_v13 = vpop.permute.xlu1 %542 }
 0x657   :  { %v548_v14 = vsel %vm230_vm5, %v543_v13, 0  ;;  %1009 = vmatmul.msk.bf16.vlgmr.msra.gmra.mxu0 %vm176_vm2, %v493_v29 }
 0x658   :  { %557 = vmatpush.bf16.msrb.mxu2 %v548_v14 }
 0x65b   :  { %1011 = vmatmul.msk.bf16.vlgmr.msrb.gmra.mxu2 %vm176_vm2, %v420_v21 }
 0x65e   :  { %v720_v15 = vpop.permute.xlu1 %719 }
 0x65f   :  { %v725_v54 = vsel %vm230_vm5, %v720_v15, 0 }
 0x660   :  { %734 = vmatpush.bf16.msra.mxu2 %v725_v54 }
 0x666   :  { %v834_v16 = vpop.permute.xlu1 %833 }
 0x667   :  { %v839_v17 = vsel %vm176_vm2, %v834_v16, 0 }
 0x668   :  { %848 = vmatpush.bf16.xpose.msrb.mxu2 %v839_v17 }
 0x66b   :  { %644 = vrot.lane.b32.xlu2 %v1403_v50, %s1133_s24  ;;  %s964_s24 = sshll.u32 %s1142_s1, 4  ;;  %s965_s24 = int_to_ptr.vmem [resolvable:$true] %s964_s24 }
 0x66e   :  { %v762_v33 = vpop.permute.xlu1 %761 }
 0x66f   :  { %v767_v62 = vsel %vm176_vm2, %v762_v33, 0 }
 0x673   :  { %759 = vrot.lane.b32.xlu2 %v1326_v36, %s1137_s16 }
 0x676   :  { %v832_v38 = vpop.permute.xlu1 %831 }
 0x6b6   :  { %v710_v22 = vpop.xlane.xlu2 %709 }
 0x6b7   :  { %1083 = vrcp.f32 %v710_v22 }
 0x6bd   :  { %v1084_v20 = vpop.eup %1083 }
 0x6be   :  { %v713_v23 = vpop.xlane.xlu2 %712  ;;  %v716_v6 = vmul.f32 %v1084_v20, %v1076_v58 }
 0x6bf   :  { %1085 = vrcp.f32 %v713_v23  ;;  %v635_v19 = vpop.xlane.xlu0 %634 }
 0x6c0   :  { %1087 = vrcp.f32 %v635_v19 }
 0x6c5   :  { %v1086_v21 = vpop.eup %1085 }
 0x6c6   :  { %v717_v27 = vmul.f32 %v1086_v21, %v1078_v1  ;;  %v632_v49 = vpop.xlane.xlu2 %631  ;;  %v1088_v31 = vpop.eup %1087 }
 0x6c7   :  { %1089 = vrcp.f32 %v632_v49  ;;  %v639_v36 = vmul.f32 %v1088_v31, %v1080_v4 }
 0x6c8   :  { %v718_v29 = vpack.c.bf16 %v717_v27, %v716_v6 }
 0x6ca   :  { %1015 = vmatmul.msk.bf16.vlgmr.msra.gmra.mxu2 %vm176_vm2, %v718_v29 }
 0x6cb   :  { %947 = vmatpush.bf16.msra.mxu2 %v548_v14 }
 0x6cd   :  { %v1090_v32 = vpop.eup %1089 }
 0x6ce   :  { %v638_v35 = vmul.f32 %v1090_v32, %v1082_v51  ;;  %v645_v47 = vpop.permute.xlu2 %644 }
 0x6cf   :  { %v650_v5 = vsel %vm230_vm5, %v645_v47, 0 }
 0x6d0   :  { %v640_v37 = vpack.c.bf16 %v639_v36, %v638_v35  ;;  %659 = vmatpush.bf16.msrb.mxu0 %v650_v5  ;;  %v539_v36 = vadd.f32 %v1371_v28, %v1365_v25 }
 0x6d3   :  { %1013 = vmatmul.msk.bf16.vlgmr.msrb.gmra.mxu0 %vm176_vm2, %v640_v37 }
 0x6d4   :  { %776 = vmatpush.bf16.xpose.msra.mxu0 %v767_v62  ;;  %v513_v39 = vpop.f32.mrf.mxu0 }
 0x6d6   :  { %v760_v44 = vpop.permute.xlu2 %759 }
 0x6da   :  { %1019 = vmatmul.msk.bf16.vlgmr.msrb.gmra.mxu2 %vm176_vm2, %v832_v38 }
 0x6dc   :  { %913 = vmatpush.bf16.msrb.mxu0 %v502_v12  ;;  %v515_v46 = vpop.f32.mrf.mxu0 }
 0x6de   :  { %v559_v40 = vpop.f32.mrf.mxu2 }
 0x6df   :  { %v560_v42 = vadd.f32 %v559_v40, %v513_v39 }
 0x6e1   :  { %v1438_v43 = vadd.f32 %v560_v42, %v537_v41 }
 0x6e3   :  { %1017 = vmatmul.msk.bf16.vlgmr.msra.gmra.mxu0 %vm176_vm2, %v760_v44 }
 0x6e6   :  { %v1441_v45 = vpop.f32.mrf.mxu2 }
 0x6e7   :  { %v562_v33 = vadd.f32 %v1441_v45, %v515_v46 }
 0x6e9   :  { %v565_v35 = vadd.f32 %v562_v33, %v539_v36 }
 0x74d   :  { %v736_v3 = vpop.f32.mrf.mxu2 }
 0x750   :  { %v1443_v2 = vpop.f32.mrf.mxu0 }
 0x755   :  { %v738_v34 = vpop.f32.mrf.mxu2 }
 0x756   :  { %v741_v52 = vpack.c.bf16 %v738_v34, %v736_v3 }
 0x758   :  { %v1445_v53 = vpop.f32.mrf.mxu0  ;;  %1016 = vmatmul.msk.bf16.vlgmr.msrb.gmra.mxu3 %vm176_vm2, %v741_v52 }
 0x759   :  { %v666_v24 = vpack.c.bf16 %v1445_v53, %v1443_v2 }
 0x75d   :  { %v850_v26 = vpop.f32.mrf.mxu2 }
 0x75e   :  { %v855_v55 = vsel %vm589_vm6, -1e+09, %v850_v26 }
 0x75f   :  { %v857_v56 = vsel %vm176_vm2, %v855_v55, -inf }
 0x760   :  { %858 = vmax.xlane.f32.xlu0 %v857_v56  ;;  %v778_v57 = vpop.f32.mrf.mxu0 }
 0x761   :  { %v783_v58 = vsel %vm589_vm6, -1e+09, %v778_v57 }
 0x762   :  { %v785_v59 = vsel %vm176_vm2, %v783_v58, -inf }
 0x763   :  { %786 = vmax.xlane.f32.xlu1 %v785_v59 }
 0x765   :  { %v852_v60 = vpop.f32.mrf.mxu2 }
 0x766   :  { %v856_v61 = vsel %vm590_vm7, -1e+09, %v852_v60 }
 0x767   :  { %v860_v63 = vsel %vm176_vm2, %v856_v61, -inf }
 0x768   :  { %861 = vmax.xlane.f32.xlu0 %v860_v63  ;;  %v780_v0 = vpop.f32.mrf.mxu0 }
 0x769   :  { %v784_v1 = vsel %vm590_vm7, -1e+09, %v780_v0 }
 0x76a   :  { %v788_v4 = vsel %vm176_vm2, %v784_v1, -inf }
 0x76b   :  { %789 = vmax.xlane.f32.xlu2 %v788_v4 }
 0x77c   :  { %808 = vrot.lane.b32.xlu1 %v1403_v50, %s1141_s20 }
 0x7d3   :  { %v859_v30 = vpop.xlane.xlu0 %858 }
 0x7d4   :  { %v863_v7 = vsub.f32 %v855_v55, %v859_v30 }
 0x7d6   :  { %v865_v8 = vmul.f32 1.442695, %v863_v7  ;;  %v787_v51 = vpop.xlane.xlu1 %786 }
 0x7d7   :  { %v791_v10 = vsub.f32 %v783_v58, %v787_v51 }
 0x7d8   :  { %1091 = vpow2.f32 %v865_v8 }
 0x7d9   :  { %v793_v11 = vmul.f32 1.442695, %v791_v10 }
 0x7db   :  { %v862_v12 = vpop.xlane.xlu0 %861  ;;  %1093 = vpow2.f32 %v793_v11  ;;  %v754_v45 = vpop.f32.mrf.mxu3 }
 0x7dc   :  { %v864_v13 = vsub.f32 %v856_v61, %v862_v12 }
 0x7de   :  { %v1092_v14 = vpop.eup %1091  ;;  %v867_v15 = vmul.f32 1.442695, %v864_v13  ;;  %v790_v48 = vpop.xlane.xlu2 %789 }
 0x7df   :  { %v792_v54 = vsub.f32 %v784_v1, %v790_v48  ;;  %v869_v16 = vsel %vm176_vm2, %v1092_v14, 0.0 }
 0x7e0   :  { %1095 = vpow2.f32 %v867_v15  ;;  %870 = vadd.xlane.f32.xlu0 %v869_v16 }
 0x7e1   :  { %v795_v17 = vmul.f32 1.442695, %v792_v54  ;;  %v1094_v22 = vpop.eup %1093 }
 0x7e2   :  { %v797_v19 = vsel %vm176_vm2, %v1094_v22, 0.0 }
 0x7e3   :  { %1097 = vpow2.f32 %v795_v17  ;;  %v756_v52 = vpop.f32.mrf.mxu3 }
 0x7e6   :  { %v1096_v23 = vpop.eup %1095 }
 0x7e7   :  { %v872_v20 = vsel %vm176_vm2, %v1096_v23, 0.0 }
 0x7e8   :  { %798 = vadd.xlane.f32.xlu0 %v797_v19  ;;  %873 = vadd.xlane.f32.xlu2 %v872_v20 }
 0x7e9   :  { %v1098_v21 = vpop.eup %1097 }
 0x7ea   :  { %v800_v49 = vsel %vm176_vm2, %v1098_v21, 0.0 }
 0x7ee   :  { %v809_v6 = vpop.permute.xlu1 %808 }
 0x7ef   :  { %v814_v27 = vsel %vm230_vm5, %v809_v6, 0 }
 0x7f0   :  { %823 = vmatpush.bf16.msrb.mxu1 %v814_v27  ;;  %801 = vadd.xlane.f32.xlu0 %v800_v49 }
 0x7f4   :  { %930 = vmatpush.bf16.msra.mxu1 %v1347_v9 }
 0x800   :  { %566 = vrot.lane.b32.xlu2 %v1219_v18, %s1139_s18 }
 0x804   :  { %880 = vrot.lane.b32.xlu0 %v1403_v50, %s1140_s19 }
 0x853   :  { %v871_v29 = vpop.xlane.xlu0 %870 }
 0x85b   :  { %v874_v31 = vpop.xlane.xlu2 %873  ;;  %v799_v32 = vpop.xlane.xlu0 %798 }
 0x85c   :  { %1099 = vrcp.f32 %v799_v32 }
 0x862   :  { %v1100_v18 = vpop.eup %1099 }
 0x863   :  { %v567_v47 = vpop.permute.xlu2 %566  ;;  %v802_v5 = vpop.xlane.xlu0 %801  ;;  %v805_v37 = vmul.f32 %v1100_v18, %v1094_v22 }
 0x864   :  { %v569_v9 = vadd.f32 %v567_v47, %v1438_v43  ;;  %v570_v62 = vadd.f32 %v567_v47, %v565_v35  ;;  %1101 = vrcp.f32 %v802_v5 }
 0x865   :  { %1103 = vrcp.f32 %v874_v31 }
 0x866   :  { %571 = vst.msk [vmem:[#allocation2] sm:$0xff] %vm88_vm1, %v569_v9  ;;  %1105 = vrcp.f32 %v871_v29 }
 0x867   :  { %572 = vst.msk [vmem:[#allocation2 + $0x8] sm:$0xff] %vm88_vm1, %v570_v62 }
 0x86a   :  { %v1102_v50 = vpop.eup %1101 }
 0x86b   :  { %v806_v38 = vmul.f32 %v1102_v50, %v1098_v21  ;;  %v1104_v25 = vpop.eup %1103 }
 0x86c   :  { %v1106_v28 = vpop.eup %1105  ;;  %v878_v40 = vmul.f32 %v1104_v25, %v1096_v23 }
 0x86d   :  { %v807_v39 = vpack.c.bf16 %v806_v38, %v805_v37  ;;  %v877_v42 = vmul.f32 %v1106_v28, %v1092_v14 }
 0x86f   :  { %1018 = vmatmul.msk.bf16.vlgmr.msrb.gmra.mxu1 %vm176_vm2, %v807_v39  ;;  %v879_v44 = vpack.c.bf16 %v878_v40, %v877_v42 }
 0x876   :  { %v881_v41 = vpop.permute.xlu0 %880 }
 0x877   :  { %v886_v43 = vsel %vm230_vm5, %v881_v41, 0 }
 0x878   :  { %895 = vmatpush.bf16.msra.mxu3 %v886_v43 }
 0x87b   :  { %1020 = vmatmul.msk.bf16.vlgmr.msra.gmra.mxu3 %vm176_vm2, %v879_v44 }
 0x87f   :  { %1022 = vmatmul.msk.bf16.vlgmr.msra.gmra.mxu1 %vm176_vm2, %v666_v24 }
 0x8ec   :  { %v825_v46 = vpop.f32.mrf.mxu1 }
 0x8f4   :  { %v827_v3 = vpop.f32.mrf.mxu1 }
 0x8f5   :  { %v830_v34 = vpack.c.bf16 %v827_v3, %v825_v46 }
 0x8f7   :  { %1023 = vmatmul.msk.bf16.vlgmr.msra.gmra.mxu2 %vm176_vm2, %v830_v34 }
 0x8fc   :  { %v932_v57 = vpop.f32.mrf.mxu1 }
 0x8fd   :  { %v933_v60 = vadd.f32 %v932_v57, %v754_v45 }
 0x8fe   :  { %v897_v26 = vpop.f32.mrf.mxu3 }
 0x904   :  { %v934_v24 = vpop.f32.mrf.mxu1 }
 0x905   :  { %v935_v1 = vadd.f32 %v934_v24, %v756_v52 }
 0x906   :  { %v899_v55 = vpop.f32.mrf.mxu3 }
 0x907   :  { %v902_v56 = vpack.c.bf16 %v899_v55, %v897_v26 }
 0x909   :  { %1021 = vmatmul.msk.bf16.vlgmr.msrb.gmra.mxu0 %vm176_vm2, %v902_v56 }
 0x97a   :  { %v949_v58 = vpop.f32.mrf.mxu2 }
 0x982   :  { %v951_v63 = vpop.f32.mrf.mxu2 }
 0x986   :  { %v915_v59 = vpop.f32.mrf.mxu0 }
 0x987   :  { %v950_v61 = vadd.f32 %v949_v58, %v915_v59 }
 0x989   :  { %v954_v2 = vadd.f32 %v950_v61, %v933_v60 }
 0x98b   :  { %v956_v53 = vadd.f32 %v954_v2, %v567_v47 }
 0x98d   :  { %958 = vst.msk [vmem:[#allocation2 + $0x10] sm:$0xff] %vm88_vm1, %v956_v53 }
 0x98e   :  { %v917_v0 = vpop.f32.mrf.mxu0 }
 0x98f   :  { %v952_v4 = vadd.f32 %v951_v63, %v917_v0 }
 0x991   :  { %v955_v30 = vadd.f32 %v952_v4, %v935_v1 }
 0x993   :  { %v957_v7 = vadd.f32 %v955_v30, %v567_v47 }
 0x995   :  { %959 = vst.msk [vmem:[#allocation2 + $0x18] sm:$0xff] %vm88_vm1, %v957_v7 }
 0x996   :  { %972 = dma.vmem_to_hbm [thread:$0]  %s965_s24, 512, %s967_s28, [#allocation3], %s1143_s29, %s1143_s29, %s1144_s30  }
 0x997   :  { %1131 = dma.done.wait [#allocation3], 512  }
 0x998   :  { %1132 = vsyncadd [#allocation3], 4294966784 }
 0x999   :  { %977 = vsyncpa [#allocation3], 1 }

</bundles_post_ra>
